<compile_context>
chip_gen: v7x
topology: tpu7x:2x2x1
jax: 0.10.0
libtpu: 0.0.40
codegen_flags: <defaults>
</compile_context>

<pallas_src>
import jax
import jax.numpy as jnp
from jax.experimental import pallas as pl
from jax.experimental.pallas import tpu as pltpu


def _round_up(x, m):
    return ((x + m - 1) // m) * m


def _tpu_vmem_bytes():
    """Best-effort per-core VMEM capacity query (falls back to the smallest, v7x)."""
    try:
        return int(pltpu.get_tpu_info().vmem_capacity_bytes)
    except Exception:  # info query only -- never masks kernel compile/runtime errors.
        return 64 << 20


def _choose_tile_b(B, vmem_small):
    if vmem_small:
        # v7x: 64 MiB VMEM but 2 TensorCores -> keep >= 2 batch tiles when possible.
        if B >= 512:
            return 256
        if B >= 256:
            return 128
    else:
        # v5e/v6e: single TensorCore, 128 MiB VMEM -> bigger M tiles amortize the
        # ~0.35 us per-grid-step overhead and fill the MXU better.
        if B >= 1024:
            return 512
        if B >= 256:
            return 256
    return _round_up(max(B, 1), 16)      # bf16 sublane-packing granularity


def _choose_tile_n(num_modulations, h_last, cb, vmem_small):
    """Last-layer output-column tile: lane-dense and VMEM-budget aware."""
    n_pad = _round_up(num_modulations, 128)
    cap = 512 if vmem_small else 2048
    budget = (10 << 20) if vmem_small else (28 << 20)
    if n_pad <= cap and h_last * n_pad * cb <= budget:
        return n_pad, n_pad                           # single (constant) output tile
    max_tile = max(128, (budget // (2 * h_last * cb)) // 128 * 128)
    tile_n = int(min(max_tile, cap))
    return tile_n, _round_up(n_pad, tile_n)


# --------------------------------------------------------------------------- kernels
def _make_kernel_fused(num_layers, compute_dtype):
    """Path A: single output tile; whole MLP fused, no scratch round-trip."""

    def kernel(x_ref, *refs):
        out_ref = refs[-1]
        wb = refs[:-1]
        h = x_ref[...]
        for l in range(num_layers):
            w = wb[2 * l][...]
            b = wb[2 * l + 1][...].astype(jnp.float32)
            acc = jnp.dot(h.astype(compute_dtype), w,
                          preferred_element_type=jnp.float32) + b
            h = jnp.maximum(acc, 0.0) if l < num_layers - 1 else acc
        out_ref[...] = h.astype(out_ref.dtype)

    return kernel


def _make_kernel_weight_resident(num_layers, compute_dtype):
    """Path B: grid=(n, b), n outer; full-batch hidden cache, weight slices fetched once."""

    def kernel(x_ref, *refs):
        out_ref, h_cache = refs[-2], refs[-1]     # h_cache: (grid_b, tile_b, h_last)
        wb = refs[:-2]
        b_idx = pl.program_id(1)

        @pl.when(pl.program_id(0) == 0)           # produce hidden on the n==0 sweep
        def _compute_hidden():
            h = x_ref[...]
            for l in range(num_layers - 1):
                w = wb[2 * l][...]
                b = wb[2 * l + 1][...].astype(jnp.float32)
                h = jnp.maximum(
                    jnp.dot(h.astype(compute_dtype), w,
                            preferred_element_type=jnp.float32) + b, 0.0)
            h_cache[b_idx] = h.astype(h_cache.dtype)

        w = wb[-2][...]
        b = wb[-1][...].astype(jnp.float32)
        out_ref[...] = (jnp.dot(h_cache[b_idx], w,
                                preferred_element_type=jnp.float32)
                        + b).astype(out_ref.dtype)

    return kernel


def _make_kernel_col_tiled(num_layers, compute_dtype):
    """Path C: grid=(b, n), n inner; per-batch-tile hidden scratch."""

    def kernel(x_ref, *refs):
        out_ref, h_ref = refs[-2], refs[-1]       # h_ref: (tile_b, h_last)
        wb = refs[:-2]

        @pl.when(pl.program_id(1) == 0)           # hidden computed once per batch tile
        def _compute_hidden():
            h = x_ref[...]
            for l in range(num_layers - 1):
                w = wb[2 * l][...]
                b = wb[2 * l + 1][...].astype(jnp.float32)
                h = jnp.maximum(
                    jnp.dot(h.astype(compute_dtype), w,
                            preferred_element_type=jnp.float32) + b, 0.0)
            h_ref[...] = h.astype(h_ref.dtype)

        w = wb[-2][...]
        b = wb[-1][...].astype(jnp.float32)
        out_ref[...] = (jnp.dot(h_ref[...], w,
                                preferred_element_type=jnp.float32)
                        + b).astype(out_ref.dtype)

    return kernel


# --------------------------------------------------------------------------- wrapper
def latent_to_modulation(latent, weights, biases, *, tile_b=None, tile_n=None,
                         compute_dtype=jnp.bfloat16, out_dtype=None,
                         weight_resident=None, single_buffer_const_params=True):
    """LatentToModulation forward pass as one fused pallas_call.

    Args:
      latent:  [B, latent_dim] input latents.
      weights: list; weights[i] has shape [in_i, out_i] (transpose of nn.Linear's [out,in]).
      biases:  list; biases[i] has shape [out_i].
      tile_b:  optional batch tile (multiple of 16 for 16-bit compute dtypes).
      tile_n:  optional last-layer output-column tile (multiple of 128).
      compute_dtype: dtype fed to the MXU (bf16 default, f32 accumulation).
      out_dtype: output dtype (defaults to latent.dtype; pass bf16 to halve writeback).
      weight_resident: for a column-tiled output, force (True)/forbid (False) the
        weight-resident path; None = auto by VMEM fit.
      single_buffer_const_params: single-buffer constant weight/bias blocks.

    Returns:
      [B, num_modulations] modulations.
    """
    num_layers = len(weights)
    assert len(biases) == num_layers and num_layers >= 1
    B, latent_dim = latent.shape
    assert weights[0].shape[0] == latent_dim
    num_modulations = weights[-1].shape[1]
    if out_dtype is None:
        out_dtype = latent.dtype

    cb = jnp.dtype(compute_dtype).itemsize
    ob = jnp.dtype(out_dtype).itemsize
    vmem_small = _tpu_vmem_bytes() <= (64 << 20)

    # Natural (unpadded) feature dims; only the final output columns get padded.
    dims = [latent_dim] + [w.shape[1] for w in weights]
    h_last = dims[-2]                              # contraction dim of the last layer

    # ---- tiling ------------------------------------------------------------------
    if tile_b is None:
        tile_b = _choose_tile_b(B, vmem_small)
    tb_align = 16 if cb == 2 else 8
    assert tile_b % tb_align == 0, f"tile_b must be a multiple of {tb_align}"
    B_pad = _round_up(B, tile_b)
    grid_b = B_pad // tile_b

    if tile_n is None:
        tile_n, n_pad = _choose_tile_n(num_modulations, h_last, cb, vmem_small)
    else:
        assert tile_n % 128 == 0, "tile_n must be a multiple of 128"
        n_pad = _round_up(num_modulations, tile_n)
    grid_n = n_pad // tile_n

    # ---- host-side cast + minimal zero padding -------------------------------------
    x_p = jnp.pad(latent.astype(compute_dtype), ((0, B_pad - B), (0, 0)))
    weights_p = [w.astype(compute_dtype) for w in weights]
    biases_p = [b.reshape(1, -1).astype(jnp.float32) for b in biases]
    if n_pad != num_modulations:
        pad_n = n_pad - num_modulations
        weights_p[-1] = jnp.pad(weights_p[-1], ((0, 0), (0, pad_n)))
        biases_p[-1] = jnp.pad(biases_p[-1], ((0, 0), (0, pad_n)))

    args = [x_p]
    for w, b in zip(weights_p, biases_p):
        args += [w, b]

    # ---- BlockSpecs -----------------------------------------------------------------
    use_single_buffer = single_buffer_const_params and hasattr(pl, "Buffered")

    def const_spec(shape):
        # Constant block index across the whole grid -> one DMA, one VMEM buffer.
        if use_single_buffer:
            return pl.BlockSpec(shape, lambda *_: (0, 0), pipeline_mode=pl.Buffered(1))
        return pl.BlockSpec(shape, lambda *_: (0, 0))

    hidden_specs = []
    for l in range(num_layers - 1):
        hidden_specs.append(const_spec((dims[l], dims[l + 1])))
        hidden_specs.append(const_spec((1, dims[l + 1])))

    cache_budget = (8 << 20) if vmem_small else (16 << 20)
    if weight_resident is None:
        weight_resident = B_pad * h_last * cb <= cache_budget

    if grid_n == 1:
        # Path A --------------------------------------------------------------------
        kernel = _make_kernel_fused(num_layers, compute_dtype)
        grid = (grid_b,)
        in_specs = ([pl.BlockSpec((tile_b, latent_dim), lambda i: (i, 0))]
                    + hidden_specs
                    + [const_spec((h_last, n_pad)), const_spec((1, n_pad))])
        out_specs = pl.BlockSpec((tile_b, n_pad), lambda i: (i, 0))
        scratch = []
        semantics = ("parallel",)
        scratch_bytes = 0
    elif weight_resident:
        # Path B: n outer -> each last-layer weight slice fetched exactly once.
        # (The small x stream is re-fetched per n; negligible vs the weight stream.)
        kernel = _make_kernel_weight_resident(num_layers, compute_dtype)
        grid = (grid_n, grid_b)
        in_specs = ([pl.BlockSpec((tile_b, latent_dim), lambda n, i: (i, 0))]
                    + hidden_specs
                    + [pl.BlockSpec((h_last, tile_n), lambda n, i: (0, n)),
                       pl.BlockSpec((1, tile_n), lambda n, i: (0, n))])
        out_specs = pl.BlockSpec((tile_b, tile_n), lambda n, i: (i, n))
        scratch = [pltpu.VMEM((grid_b, tile_b, h_last), compute_dtype)]
        # TODO(synk): revisit core-parallel batch sharding for v7x here; the hidden
        # cache is produced on the n==0 sweep so the n axis must stay sequential.
        semantics = ("arbitrary", "arbitrary")
        scratch_bytes = grid_b * tile_b * h_last * cb
    else:
        # Path C: per-batch-tile hidden scratch (original structure).
        kernel = _make_kernel_col_tiled(num_layers, compute_dtype)
        grid = (grid_b, grid_n)
        in_specs = ([pl.BlockSpec((tile_b, latent_dim), lambda i, n: (i, 0))]
                    + hidden_specs
                    + [pl.BlockSpec((h_last, tile_n), lambda i, n: (0, n)),
                       pl.BlockSpec((1, tile_n), lambda i, n: (0, n))])
        out_specs = pl.BlockSpec((tile_b, tile_n), lambda i, n: (i, n))
        scratch = [pltpu.VMEM((tile_b, h_last), compute_dtype)]
        semantics = ("parallel", "arbitrary")
        scratch_bytes = tile_b * h_last * cb

    # ---- honest VMEM budget (no blanket 2x; f32 intermediates accounted) -------------
    buf_mult = 1 if use_single_buffer else 2
    param_bytes = sum(buf_mult * (dims[l] * dims[l + 1] * cb + dims[l + 1] * 4)
                      for l in range(num_layers - 1))
    if grid_n == 1:
        param_bytes += buf_mult * (h_last * n_pad * cb + n_pad * 4)
    else:
        param_bytes += 2 * (h_last * tile_n * cb + tile_n * 4)   # varies with n -> 2 bufs
    widest = max(dims[1:-1] + [tile_n])
    est = (2 * tile_b * latent_dim * cb          # input tile, double buffered
           + 2 * tile_b * tile_n * ob            # output tile, double buffered
           + param_bytes + scratch_bytes
           + 3 * tile_b * widest * 4)            # unrolled f32 layer intermediates
    cap = (48 << 20) if vmem_small else (100 << 20)
    vmem_limit = int(min(max(est + (8 << 20), 24 << 20), cap))

    # ---- cost hint for the XLA scheduler ----------------------------------------------
    flops = 2 * B_pad * sum(dims[l] * (dims[l + 1] if l < num_layers - 1 else n_pad)
                            for l in range(num_layers))
    bytes_accessed = (x_p.size * cb + B_pad * n_pad * ob
                      + sum(w.size * cb for w in weights_p)
                      + sum(b.size * 4 for b in biases_p))
    cost = pl.CostEstimate(flops=int(flops), transcendentals=0,
                           bytes_accessed=int(bytes_accessed))

    out_p = pl.pallas_call(
        kernel,
        out_shape=jax.ShapeDtypeStruct((B_pad, n_pad), out_dtype),
        grid_spec=pltpu.PrefetchScalarGridSpec(
            num_scalar_prefetch=0,
            grid=grid,
            in_specs=in_specs,
            out_specs=out_specs,
            scratch_shapes=scratch,
        ),
        compiler_params=pltpu.CompilerParams(
            dimension_semantics=semantics,
            vmem_limit_bytes=vmem_limit,
        ),
        cost_estimate=cost,
    )(*args)

    return out_p[:B, :num_modulations]


# --------------------------------------------------------------------------- helpers
def init_params(key, latent_dim, num_modulations, dim_hidden, num_layers):
    """Deterministic params matching LatentToModulation's layer shapes ([in, out])."""
    if num_layers == 1:
        shapes = [(latent_dim, num_modulations)]
    else:
        shapes = ([(latent_dim, dim_hidden)]
                  + [(dim_hidden, dim_hidden)] * (num_layers - 2)
                  + [(dim_hidden, num_modulations)])
    weights, biases = [], []
    for din, dout in shapes:
        key, kw, kb = jax.random.split(key, 3)
        bound = 1.0 / (din ** 0.5)
        weights.append(jax.random.uniform(kw, (din, dout), jnp.float32, -bound, bound))
        biases.append(jax.random.uniform(kb, (dout,), jnp.float32, -bound, bound))
    return weights, biases


def reference_forward(latent, weights, biases, compute_dtype=jnp.float32):
    """Pure-JAX reference applying the same per-layer casts as the kernel."""
    h = latent.astype(jnp.float32)
    n = len(weights)
    for i, (w, b) in enumerate(zip(weights, biases)):
        h = jnp.dot(h.astype(compute_dtype), w.astype(compute_dtype),
                    preferred_element_type=jnp.float32) + b.astype(jnp.float32)
        if i < n - 1:
            h = jnp.maximum(h, 0.0)
    return h.astype(latent.dtype)


if __name__ == "__main__":
    # Small shapes consistent with LatentToModulation.
    B, latent_dim, dim_hidden, num_layers = 32, 64, 64, 3
    num_modulations = 104                  # deliberately not a multiple of 128

    key = jax.random.PRNGKey(0)
    key, klatent, kparam, kparam2 = jax.random.split(key, 4)
    latent = jax.random.normal(klatent, (B, latent_dim), jnp.float32)
    weights, biases = init_params(kparam, latent_dim, num_modulations,
                                  dim_hidden, num_layers)

    # 1) f32 compute path (single output tile -> fused path A), tight check.
    out = jax.block_until_ready(
        latent_to_modulation(latent, weights, biases, compute_dtype=jnp.float32))
    ref = reference_forward(latent, weights, biases, jnp.float32)
    assert out.shape == (B, num_modulations)
    assert jnp.allclose(out, ref, atol=1e-4, rtol=1e-4)

    # 2) Default path: bf16 MXU matmuls with f32 accumulation (path A).
    out = jax.block_until_ready(latent_to_modulation(latent, weights, biases))
    ref = reference_forward(latent, weights, biases, jnp.bfloat16)
    assert jnp.allclose(out, ref, atol=1e-2, rtol=1e-2)

    # 3) Column-tiled last layer: weight-resident path B and fallback path C.
    num_mod_big = 320
    weights2, biases2 = init_params(kparam2, latent_dim, num_mod_big,
                                    dim_hidden, num_layers)
    ref2 = reference_forward(latent, weights2, biases2, jnp.bfloat16)
    out_b = jax.block_until_ready(
        latent_to_modulation(latent, weights2, biases2, tile_n=128,
                             weight_resident=True))
    out_c = jax.block_until_ready(
        latent_to_modulation(latent, weights2, biases2, tile_n=128,
                             weight_resident=False))
    assert out_b.shape == (B, num_mod_big)
    assert jnp.allclose(out_b, ref2, atol=1e-2, rtol=1e-2)
    assert jnp.allclose(out_c, ref2, atol=1e-2, rtol=1e-2)

    print("KERNEL_OK")
</pallas_src>

<mosaic_0001>
module attributes {stable_mosaic.version = 11 : i64} {
  func.func @kernel(%arg0: i32, %arg1: memref<32x64xf32, #tpu.memory_space<vmem>>, %arg2: memref<64x64xf32, #tpu.memory_space<vmem>>, %arg3: memref<1x64xf32, #tpu.memory_space<vmem>>, %arg4: memref<64x64xf32, #tpu.memory_space<vmem>>, %arg5: memref<1x64xf32, #tpu.memory_space<vmem>>, %arg6: memref<64x128xf32, #tpu.memory_space<vmem>>, %arg7: memref<1x128xf32, #tpu.memory_space<vmem>>, %arg8: memref<32x128xf32, #tpu.memory_space<vmem>>) attributes {dimension_semantics = [#tpu.dimension_semantics<parallel>], iteration_bounds = array<i64: 1>, scalar_prefetch = 0 : i64, scratch_operands = 0 : i64, tpu.core_type = #tpu.core_type<tc>, window_params = [{transform_indices = @transform_0, window_bounds = array<i64: 32, 64>}, {pipeline_mode = #tpu.pipeline_mode<synchronous>, transform_indices = @transform_1, window_bounds = array<i64: 64, 64>}, {pipeline_mode = #tpu.pipeline_mode<synchronous>, transform_indices = @transform_2, window_bounds = array<i64: 1, 64>}, {pipeline_mode = #tpu.pipeline_mode<synchronous>, transform_indices = @transform_3, window_bounds = array<i64: 64, 64>}, {pipeline_mode = #tpu.pipeline_mode<synchronous>, transform_indices = @transform_4, window_bounds = array<i64: 1, 64>}, {pipeline_mode = #tpu.pipeline_mode<synchronous>, transform_indices = @transform_5, window_bounds = array<i64: 64, 128>}, {pipeline_mode = #tpu.pipeline_mode<synchronous>, transform_indices = @transform_6, window_bounds = array<i64: 1, 128>}, {transform_indices = @transform_7, window_bounds = array<i64: 32, 128>}]} {
    %c0 = arith.constant 0 : index
    %c0_0 = arith.constant 0 : index
    %0 = vector.load %arg1[%c0, %c0_0] : memref<32x64xf32, #tpu.memory_space<vmem>>, vector<32x64xf32>
    %c0_1 = arith.constant 0 : index
    %c0_2 = arith.constant 0 : index
    %1 = vector.load %arg2[%c0_1, %c0_2] : memref<64x64xf32, #tpu.memory_space<vmem>>, vector<64x64xf32>
    %c0_3 = arith.constant 0 : index
    %c0_4 = arith.constant 0 : index
    %2 = vector.load %arg3[%c0_3, %c0_4] : memref<1x64xf32, #tpu.memory_space<vmem>>, vector<1x64xf32>
    %cst = arith.constant dense<0.000000e+00> : vector<32x64xf32>
    %3 = tpu.matmul %0, %1, %cst {dimension_numbers = #tpu.dot_dimension_numbers<[1], [0], [0], [1], [0, 0, 1, 1], [], []>} : vector<32x64xf32>, vector<64x64xf32>, vector<32x64xf32> -> vector<32x64xf32>
    %4 = vector.broadcast %2 : vector<1x64xf32> to vector<32x64xf32>
    %5 = arith.addf %3, %4 : vector<32x64xf32>
    %cst_5 = arith.constant 0.000000e+00 : f32
    %6 = vector.broadcast %cst_5 : f32 to vector<32x64xf32>
    %7 = arith.maximumf %5, %6 : vector<32x64xf32>
    %c0_6 = arith.constant 0 : index
    %c0_7 = arith.constant 0 : index
    %8 = vector.load %arg4[%c0_6, %c0_7] : memref<64x64xf32, #tpu.memory_space<vmem>>, vector<64x64xf32>
    %c0_8 = arith.constant 0 : index
    %c0_9 = arith.constant 0 : index
    %9 = vector.load %arg5[%c0_8, %c0_9] : memref<1x64xf32, #tpu.memory_space<vmem>>, vector<1x64xf32>
    %cst_10 = arith.constant dense<0.000000e+00> : vector<32x64xf32>
    %10 = tpu.matmul %7, %8, %cst_10 {dimension_numbers = #tpu.dot_dimension_numbers<[1], [0], [0], [1], [0, 0, 1, 1], [], []>} : vector<32x64xf32>, vector<64x64xf32>, vector<32x64xf32> -> vector<32x64xf32>
    %11 = vector.broadcast %9 : vector<1x64xf32> to vector<32x64xf32>
    %12 = arith.addf %10, %11 : vector<32x64xf32>
    %cst_11 = arith.constant 0.000000e+00 : f32
    %13 = vector.broadcast %cst_11 : f32 to vector<32x64xf32>
    %14 = arith.maximumf %12, %13 : vector<32x64xf32>
    %c0_12 = arith.constant 0 : index
    %c0_13 = arith.constant 0 : index
    %15 = vector.load %arg6[%c0_12, %c0_13] : memref<64x128xf32, #tpu.memory_space<vmem>>, vector<64x128xf32>
    %c0_14 = arith.constant 0 : index
    %c0_15 = arith.constant 0 : index
    %16 = vector.load %arg7[%c0_14, %c0_15] : memref<1x128xf32, #tpu.memory_space<vmem>>, vector<1x128xf32>
    %cst_16 = arith.constant dense<0.000000e+00> : vector<32x128xf32>
    %17 = tpu.matmul %14, %15, %cst_16 {dimension_numbers = #tpu.dot_dimension_numbers<[1], [0], [0], [1], [0, 0, 1, 1], [], []>} : vector<32x64xf32>, vector<64x128xf32>, vector<32x128xf32> -> vector<32x128xf32>
    %18 = vector.broadcast %16 : vector<1x128xf32> to vector<32x128xf32>
    %19 = arith.addf %17, %18 : vector<32x128xf32>
    %c0_17 = arith.constant 0 : index
    %c0_18 = arith.constant 0 : index
    %20 = vector.load %arg8[%c0_17, %c0_18] : memref<32x128xf32, #tpu.memory_space<vmem>>, vector<32x128xf32>
    tpu.vector_store %arg8[%c0_17, %c0_18], %19 {strides = array<i32>} : memref<32x128xf32, #tpu.memory_space<vmem>>, vector<32x128xf32>,
    return
  }
  func.func @transform_0(%arg0: i32) -> (i32, i32) {
    %c0_i32 = arith.constant 0 : i32
    %c0_i32_0 = arith.constant 0 : i32
    return %arg0, %c0_i32 : i32, i32
  }
  func.func @transform_1(%arg0: i32) -> (i32, i32) {
    %c0_i32 = arith.constant 0 : i32
    %c0_i32_0 = arith.constant 0 : i32
    %c0_i32_1 = arith.constant 0 : i32
    return %c0_i32, %c0_i32_0 : i32, i32
  }
  func.func @transform_2(%arg0: i32) -> (i32, i32) {
    %c0_i32 = arith.constant 0 : i32
    %c0_i32_0 = arith.constant 0 : i32
    %c0_i32_1 = arith.constant 0 : i32
    return %c0_i32, %c0_i32_0 : i32, i32
  }
  func.func @transform_3(%arg0: i32) -> (i32, i32) {
    %c0_i32 = arith.constant 0 : i32
    %c0_i32_0 = arith.constant 0 : i32
    %c0_i32_1 = arith.constant 0 : i32
    return %c0_i32, %c0_i32_0 : i32, i32
  }
  func.func @transform_4(%arg0: i32) -> (i32, i32) {
    %c0_i32 = arith.constant 0 : i32
    %c0_i32_0 = arith.constant 0 : i32
    %c0_i32_1 = arith.constant 0 : i32
    return %c0_i32, %c0_i32_0 : i32, i32
  }
  func.func @transform_5(%arg0: i32) -> (i32, i32) {
    %c0_i32 = arith.constant 0 : i32
    %c0_i32_0 = arith.constant 0 : i32
    %c0_i32_1 = arith.constant 0 : i32
    return %c0_i32, %c0_i32_0 : i32, i32
  }
  func.func @transform_6(%arg0: i32) -> (i32, i32) {
    %c0_i32 = arith.constant 0 : i32
    %c0_i32_0 = arith.constant 0 : i32
    %c0_i32_1 = arith.constant 0 : i32
    return %c0_i32, %c0_i32_0 : i32, i32
  }
  func.func @transform_7(%arg0: i32) -> (i32, i32) {
    %c0_i32 = arith.constant 0 : i32
    %c0_i32_0 = arith.constant 0 : i32
    return %arg0, %c0_i32 : i32, i32
  }
}

</mosaic_0001>

<bundles_post_ra>
// kernel: tpu_custom_call.1
= control target key start
LH: loop header
LB: loop body
LE: loop exit
PB: predicated region body
PF: predicated region fallthrough
CT: control target
= control target key end

     0   :  { %12 = vsyncpa [#allocation3], 0  ;;  %s909_s0 = inlined_call_operand.hbm [shape: f32[32,64], index: 0, kind: input, shape index: {}]   ;;  %s910_s1 = inlined_call_operand.hbm [shape: f32[64,64], index: 1, kind: input, shape index: {}]   ;;  %s911_s2 = inlined_call_operand.vmem [shape: f32[1,64], index: 2, kind: input, shape index: {}]   ;;  %s912_s3 = inlined_call_operand.hbm [shape: f32[64,64], index: 3, kind: input, shape index: {}]   ;;  %s913_s4 = inlined_call_operand.vmem [shape: f32[1,64], index: 4, kind: input, shape index: {}]   ;;  %s914_s5 = inlined_call_operand.hbm [shape: f32[64,128], index: 5, kind: input, shape index: {}]   ;;  %s915_s6 = inlined_call_operand.vmem [shape: f32[1,128], index: 6, kind: input, shape index: {}]   ;;  %s916_s7 = inlined_call_operand.hbm [shape: f32[32,128], index: 7, kind: output, shape index: {}]  }
   0x1   :  { %13 = vsyncpa [#allocation6], 0 }
   0x2   :  { %14 = vsyncpa [#allocation9], 0 }
   0x3   :  { %15 = vsyncpa [#allocation4], 0  ;;  %s752_s24 = smov [#allocation5]   ;;  %s753_s26 = smov [#allocation2]  }
   0x4   :  { %s33_s25 = sshll.u32 %s752_s24, 4  ;;  %s21_s27 = sshll.u32 %s753_s26, 4  ;;  %s34_s25 = int_to_ptr.vmem [resolvable:$true] %s33_s25  ;;  %s799_s27 = int_to_ptr.vmem [resolvable:$true] %s21_s27 }
   0x5   :  { %s634_s30 = scalar_lea.hbm %s910_s1, 1024 }
   0x6   :  { %p635_p0 = scmp.ne.s32.totalorder %s910_s1, %s634_s30  ;;  %p638_p1 = scmp.lt.u32.totalorder %s634_s30, %s910_s1 }
   0x8   :  { %p640_p2 = pnand %p638_p1, %p635_p0 }
   0xa   :  { %643 = shalt.err (!%p640_p2)
}
   0xb   :  { %s644_s12 = scalar_lea.vmem %s34_s25, 1024  ;;  %p649_p4 = scmp.lt.s32.totalorder %s34_s25, %s34_s25 }
   0xc   :  { %p645_p3 = scmp.ne.s32.totalorder %s34_s25, %s644_s12  ;;  %p650_p5 = scmp.lt.s32.totalorder %s644_s12, %s644_s12 }
   0xe   :  { %p651_p6 = por %p650_p5, %p649_p4 }
  0x10   :  { %p652_p7 = pnand %p651_p6, %p645_p3 }
  0x12   :  { %655 = shalt.err (!%p652_p7)
}
  0x13   :  { %s754_s13 = smov 128   ;;  %s755_s14 = smov 8  }
  0x14   :  { %39 = dma.hbm_to_vmem [thread:$0]  %s910_s1, 1024, %s34_s25, [#allocation6], %s754_s13, %s754_s13, %s755_s14  }
  0x15   :  { %s656_s19 = scalar_lea.hbm %s909_s0, 512 }
  0x16   :  { %p657_p8 = scmp.ne.s32.totalorder %s909_s0, %s656_s19  ;;  %p660_p9 = scmp.lt.u32.totalorder %s656_s19, %s909_s0 }
  0x18   :  { %p662_p10 = pnand %p660_p9, %p657_p8 }
  0x1a   :  { %665 = shalt.err (!%p662_p10)
}
  0x1b   :  { %s666_s24 = scalar_lea.vmem %s799_s27, 512  ;;  %p671_p12 = scmp.lt.s32.totalorder %s799_s27, %s799_s27 }
  0x1c   :  { %p667_p11 = scmp.ne.s32.totalorder %s799_s27, %s666_s24  ;;  %p672_p13 = scmp.lt.s32.totalorder %s666_s24, %s666_s24 }
  0x1e   :  { %p673_p0 = por %p672_p13, %p671_p12 }
  0x20   :  { %p674_p1 = pnand %p673_p0, %p667_p11 }
  0x22   :  { %677 = shalt.err (!%p674_p1)
}
  0x23   :  { %27 = dma.hbm_to_vmem [thread:$0]  %s909_s0, 512, %s799_s27, [#allocation3], %s754_s13, %s754_s13, %s755_s14  }
  0x24   :  { %s756_s26 = smov [#allocation7]   ;;  %s757_s29 = smov [#allocation8]  }
  0x25   :  { %s47_s28 = sshll.u32 %s756_s26, 4  ;;  %s61_s30 = sshll.u32 %s757_s29, 4  ;;  %s48_s28 = int_to_ptr.vmem [resolvable:$true] %s47_s28  ;;  %s836_s30 = int_to_ptr.vmem [resolvable:$true] %s61_s30 }
  0x26   :  { %s678_s10 = scalar_lea.hbm %s912_s3, 1024 }
  0x27   :  { %p679_p2 = scmp.ne.s32.totalorder %s912_s3, %s678_s10  ;;  %p682_p3 = scmp.lt.u32.totalorder %s678_s10, %s912_s3 }
  0x29   :  { %p684_p4 = pnand %p682_p3, %p679_p2 }
  0x2b   :  { %687 = shalt.err (!%p684_p4)
}
  0x2c   :  { %s688_s0 = scalar_lea.vmem %s48_s28, 1024  ;;  %p693_p6 = scmp.lt.s32.totalorder %s48_s28, %s48_s28 }
  0x2d   :  { %p689_p5 = scmp.ne.s32.totalorder %s48_s28, %s688_s0  ;;  %p694_p7 = scmp.lt.s32.totalorder %s688_s0, %s688_s0 }
  0x2f   :  { %p695_p8 = por %p694_p7, %p693_p6 }
  0x31   :  { %p696_p9 = pnand %p695_p8, %p689_p5 }
  0x33   :  { %699 = shalt.err (!%p696_p9)
}
  0x34   :  { %53 = dma.hbm_to_vmem [thread:$0]  %s912_s3, 1024, %s48_s28, [#allocation6], %s754_s13, %s754_s13, %s755_s14  }
  0x35   :  { %s700_s20 = scalar_lea.hbm %s914_s5, 1024 }
  0x36   :  { %p701_p10 = scmp.ne.s32.totalorder %s914_s5, %s700_s20  ;;  %p704_p11 = scmp.lt.u32.totalorder %s700_s20, %s914_s5 }
  0x38   :  { %p706_p12 = pnand %p704_p11, %p701_p10 }
  0x3a   :  { %709 = shalt.err (!%p706_p12)
}
  0x3b   :  { %s710_s1 = scalar_lea.vmem %s836_s30, 1024  ;;  %p715_p0 = scmp.lt.s32.totalorder %s836_s30, %s836_s30 }
  0x3c   :  { %p711_p13 = scmp.ne.s32.totalorder %s836_s30, %s710_s1  ;;  %p716_p1 = scmp.lt.s32.totalorder %s710_s1, %s710_s1 }
  0x3e   :  { %p717_p2 = por %p716_p1, %p715_p0 }
  0x40   :  { %p718_p3 = pnand %p717_p2, %p711_p13 }
  0x42   :  { %721 = shalt.err (!%p718_p3)
}
  0x43   :  { %67 = dma.hbm_to_vmem [thread:$0]  %s914_s5, 1024, %s836_s30, [#allocation9], %s754_s13, %s754_s13, %s755_s14  }
  0x44   :  { %744 = dma.done.wait [#allocation3], 512  }
  0x45   :  { %745 = vsyncadd [#allocation3], 4294966784 }
  0x46   :  { %746 = dma.done.wait [#allocation6], 2048  }
  0x47   :  { %747 = vsyncadd [#allocation6], 4294965248 }
  0x48   :  { %748 = dma.done.wait [#allocation9], 1024  }
  0x49   :  { %749 = vsyncadd [#allocation9], 4294966272  ;;  %v86_v0 = vld [vmem:[#allocation5] sm:$0xff]  ;;  %v87_v1 = vld [vmem:[#allocation5 + $0x8] sm:$0xff]  ;;  %vm101_vm0 = vcmask 523264   ;;  %s758_s30 = smov [#allocation10]  }
  0x4a   :  { %v88_v2 = vld [vmem:[#allocation5 + $0x10] sm:$0xff]  ;;  %v571_v3 = vpack.c.bf16 %v87_v1, %v86_v0  ;;  %v89_v4 = vld [vmem:[#allocation5 + $0x18] sm:$0xff]  ;;  %v90_v6 = vld [vmem:[#allocation5 + $0x20] sm:$0xff]  ;;  %s440_s8 = sshll.u32 %s758_s30, 4  ;;  %s441_s8 = int_to_ptr.vmem [resolvable:$true] %s440_s8 }
  0x4b   :  { %v575_v5 = vpack.c.bf16 %v89_v4, %v88_v2  ;;  %v91_v7 = vld [vmem:[#allocation5 + $0x28] sm:$0xff]  ;;  %v82_v8 = vld [vmem:[#allocation2] sm:$0xff]  ;;  %v205_v11 = vld [vmem:[#allocation7 + $0x10] sm:$0xff]  ;;  %s722_s9 = scalar_lea.vmem %s441_s8, 512  ;;  %p727_p5 = scmp.lt.s32.totalorder %s441_s8, %s441_s8 }
  0x4c   :  { %572 = vmatprep.subr.bf16.mxu0 %v571_v3  ;;  %521 = vmatprep.mubr.msk.f32.mxu0 %vm101_vm0, %v82_v8  ;;  %v203_v9 = vld [vmem:[#allocation7] sm:$0xff]  ;;  %v204_v10 = vld [vmem:[#allocation7 + $0x8] sm:$0xff]  ;;  %v579_v12 = vpack.c.bf16 %v91_v7, %v90_v6  ;;  %v92_v13 = vld [vmem:[#allocation5 + $0x30] sm:$0xff]  ;;  %p723_p4 = scmp.ne.s32.totalorder %s441_s8, %s722_s9  ;;  %p728_p6 = scmp.lt.s32.totalorder %s722_s9, %s722_s9 }
  0x4d   :  { %574 = vmatpush3.bf16.msra.mxu0 %v571_v3  ;;  %v587_v14 = vpack.c.bf16 %v204_v10, %v203_v9  ;;  %v206_v15 = vld [vmem:[#allocation7 + $0x18] sm:$0xff]  ;;  %v207_v18 = vld [vmem:[#allocation7 + $0x20] sm:$0xff]  ;;  %v208_v19 = vld [vmem:[#allocation7 + $0x28] sm:$0xff] }
  0x4e   :  { %576 = vmatprep.subr.bf16.mxu0 %v575_v5  ;;  %v93_v16 = vld [vmem:[#allocation5 + $0x38] sm:$0xff]  ;;  %v591_v17 = vpack.c.bf16 %v206_v15, %v205_v11  ;;  %v595_v21 = vpack.c.bf16 %v208_v19, %v207_v18  ;;  %v83_v22 = vld [vmem:[#allocation2 + $0x8] sm:$0xff]  ;;  %v84_v23 = vld [vmem:[#allocation2 + $0x10] sm:$0xff]  ;;  %p729_p7 = por %p728_p6, %p727_p5 }
  0x4f   :  { %588 = vmatprep.subr.bf16.mxu1 %v587_v14  ;;  %v583_v20 = vpack.c.bf16 %v93_v16, %v92_v13  ;;  %v85_v24 = vld [vmem:[#allocation2 + $0x18] sm:$0xff]  ;;  %v209_v25 = vld [vmem:[#allocation7 + $0x30] sm:$0xff]  ;;  %v319_v28 = vld [vmem:[#allocation8] sm:$0xff] }
  0x50   :  { %590 = vmatpush3.bf16.msra.mxu1 %v587_v14  ;;  %v210_v26 = vld [vmem:[#allocation7 + $0x38] sm:$0xff]  ;;  %v320_v29 = vld [vmem:[#allocation8 + $0x8] sm:$0xff]  ;;  %v321_v30 = vld [vmem:[#allocation8 + $0x10] sm:$0xff]  ;;  %p730_p8 = pnand %p729_p7, %p723_p4 }
  0x51   :  { %578 = vmatpush3.bf16.msra.mxu0 %v575_v5  ;;  %592 = vmatprep.subr.bf16.mxu1 %v591_v17  ;;  %v599_v27 = vpack.c.bf16 %v210_v26, %v209_v25  ;;  %v603_v31 = vpack.c.bf16 %v320_v29, %v319_v28  ;;  %v322_v32 = vld [vmem:[#allocation8 + $0x18] sm:$0xff]  ;;  %v323_v34 = vld [vmem:[#allocation8 + $0x20] sm:$0xff]  ;;  %v324_v35 = vld [vmem:[#allocation8 + $0x28] sm:$0xff] }
  0x52   :  { %580 = vmatprep.subr.bf16.mxu0 %v579_v12  ;;  %v607_v33 = vpack.c.bf16 %v322_v32, %v321_v30  ;;  %v611_v36 = vpack.c.bf16 %v324_v35, %v323_v34  ;;  %v454_v37 = vld [vmem:[%s911_s2] ss:$0 sm:$0xff]  ;;  %v325_v50 = vld [vmem:[#allocation8 + $0x30] sm:$0xff]  ;;  %v326_v51 = vld [vmem:[#allocation8 + $0x38] sm:$0xff] }
  0x53   :  { %v615_v52 = vpack.c.bf16 %v326_v51, %v325_v50  ;;  %v459_v53 = vld [vmem:[%s913_s4] ss:$0 sm:$0xff] }
  0x54   :  { %594 = vmatpush3.bf16.msra.mxu1 %v591_v17  ;;  %v464_v2 = vld [vmem:[%s915_s6] ss:$0 sm:$0xff] }
  0x55   :  { %582 = vmatpush3.bf16.msra.mxu0 %v579_v12  ;;  %596 = vmatprep.subr.bf16.mxu1 %v595_v21 }
  0x56   :  { %584 = vmatprep.subr.bf16.mxu0 %v583_v20 }
  0x58   :  { %598 = vmatpush3.bf16.msra.mxu1 %v595_v21 }
  0x59   :  { %586 = vmatpush3.bf16.msra.mxu0 %v583_v20  ;;  %600 = vmatprep.subr.bf16.mxu1 %v599_v27 }
  0x5a   :  { %604 = vmatprep.subr.bf16.mxu0 %v603_v31 }
  0x5c   :  { %522 = vmatmul.mubr.msk.f32.vlgmr.msra.gmra.mrb[0].mxu0 %vm101_vm0, %v83_v22  ;;  %602 = vmatpush3.bf16.msra.mxu1 %v599_v27 }
  0x5d   :  { %524 = vmatprep.mubr.msk.f32.mxu0 %vm101_vm0, %v84_v23  ;;  %619 = vmatprep.subr.bf16.mxu1 %v603_v31 }
  0x5e   :  { %606 = vmatpush3.bf16.msra.mxu0 %v603_v31 }
  0x5f   :  { %608 = vmatprep.subr.bf16.mxu0 %v607_v33 }
  0x60   :  { %525 = vmatmul.mubr.msk.f32.gmra.mrb[2].mxu0 %vm101_vm0, %v85_v24 }
  0x62   :  { %610 = vmatpush3.bf16.msra.mxu0 %v607_v33 }
  0x63   :  { %612 = vmatprep.subr.bf16.mxu0 %v611_v36 }
  0x66   :  { %614 = vmatpush3.bf16.msra.mxu0 %v611_v36 }
  0x67   :  { %616 = vmatprep.subr.bf16.mxu0 %v615_v52 }
  0x6a   :  { %618 = vmatpush3.bf16.msra.mxu0 %v615_v52 }
 0x12f   :  { %v523_v38 = vpop.f32.mrb[0].mxu0 }
 0x130   :  { %v186_v39 = vadd.f32 %v523_v38, %v454_v37  ;;  %v180_v40 = vpop.f32.mrb[1].mxu0 }
 0x131   :  { %v181_v41 = vadd.f32 %v454_v37, %v180_v40 }
 0x132   :  { %v200_v44 = vmax.f32 %v186_v39, 0.0 }
 0x133   :  { %v199_v42 = vmax.f32 %v181_v41, 0.0  ;;  %v526_v43 = vpop.f32.mrb[2].mxu0 }
 0x134   :  { %v196_v45 = vadd.f32 %v526_v43, %v454_v37  ;;  %v190_v46 = vpop.f32.mrb[3].mxu0 }
 0x135   :  { %v191_v47 = vadd.f32 %v454_v37, %v190_v46  ;;  %543 = vmatprep.mubr.msk.f32.mxu1 %vm101_vm0, %v199_v42 }
 0x136   :  { %544 = vmatmul.mubr.msk.f32.vlgmr.msra.gmra.mrb[0].mxu1 %vm101_vm0, %v200_v44  ;;  %v202_v49 = vmax.f32 %v196_v45, 0.0 }
 0x137   :  { %v201_v48 = vmax.f32 %v191_v47, 0.0  ;;  %623 = vmatpush3.bf16.msra.mxu1 %v603_v31 }
 0x138   :  { %620 = vmatprep.subr.bf16.mxu1 %v607_v33 }
 0x139   :  { %546 = vmatprep.mubr.msk.f32.mxu1 %vm101_vm0, %v201_v48 }
 0x13a   :  { %547 = vmatmul.mubr.msk.f32.gmra.mrb[2].mxu1 %vm101_vm0, %v202_v49 }
 0x13b   :  { %624 = vmatpush3.bf16.msra.mxu1 %v607_v33 }
 0x13c   :  { %621 = vmatprep.subr.bf16.mxu1 %v611_v36 }
 0x13f   :  { %625 = vmatpush3.bf16.msra.mxu1 %v611_v36 }
 0x140   :  { %622 = vmatprep.subr.bf16.mxu1 %v615_v52 }
 0x143   :  { %626 = vmatpush3.bf16.msra.mxu1 %v615_v52 }
 0x209   :  { %v545_v54 = vpop.f32.mrb[0].mxu1 }
 0x20a   :  { %v302_v55 = vadd.f32 %v545_v54, %v459_v53  ;;  %v296_v56 = vpop.f32.mrb[1].mxu1 }
 0x20b   :  { %v297_v57 = vadd.f32 %v459_v53, %v296_v56 }
 0x20c   :  { %v316_v60 = vmax.f32 %v302_v55, 0.0 }
 0x20d   :  { %v315_v58 = vmax.f32 %v297_v57, 0.0  ;;  %v548_v59 = vpop.f32.mrb[2].mxu1 }
 0x20e   :  { %v312_v61 = vadd.f32 %v548_v59, %v459_v53  ;;  %v306_v62 = vpop.f32.mrb[3].mxu1 }
 0x20f   :  { %v307_v63 = vadd.f32 %v459_v53, %v306_v62  ;;  %565 = vmatprep.mubr.msk.f32.mxu0 %vm101_vm0, %v315_v58 }
 0x210   :  { %566 = vmatmul.mubr.msk.f32.vlgmr.msra.gmra.mrb[4].mxu0 %vm101_vm0, %v316_v60  ;;  %v318_v1 = vmax.f32 %v312_v61, 0.0 }
 0x211   :  { %v317_v0 = vmax.f32 %v307_v63, 0.0 }
 0x213   :  { %568 = vmatprep.mubr.msk.f32.mxu1 %vm101_vm0, %v317_v0 }
 0x214   :  { %569 = vmatmul.mubr.msk.f32.vlgmr.msra.gmra.mrb[4].mxu1 %vm101_vm0, %v318_v1 }
 0x2e3   :  { %v567_v3 = vpop.f32.mrb[4].mxu0 }
 0x2e4   :  { %v418_v4 = vadd.f32 %v567_v3, %v464_v2  ;;  %v412_v5 = vpop.f32.mrb[5].mxu0 }
 0x2e5   :  { %v413_v6 = vadd.f32 %v464_v2, %v412_v5 }
 0x2e6   :  { %432 = vst [vmem:[#allocation10 + $0x8] sm:$0xff] %v418_v4 }
 0x2e7   :  { %431 = vst [vmem:[#allocation10] sm:$0xff] %v413_v6  ;;  %v570_v7 = vpop.f32.mrb[4].mxu1 }
 0x2e8   :  { %v428_v8 = vadd.f32 %v570_v7, %v464_v2  ;;  %v422_v9 = vpop.f32.mrb[5].mxu1 }
 0x2e9   :  { %v423_v10 = vadd.f32 %v464_v2, %v422_v9 }
 0x2ea   :  { %434 = vst [vmem:[#allocation10 + $0x18] sm:$0xff] %v428_v8 }
 0x2eb   :  { %433 = vst [vmem:[#allocation10 + $0x10] sm:$0xff] %v423_v10 }
 0x2ec   :  { %733 = shalt.err (!%p730_p8)
}
 0x2ed   :  { %s734_s11 = scalar_lea.hbm %s916_s7, 512 }
 0x2ee   :  { %p735_p9 = scmp.ne.s32.totalorder %s916_s7, %s734_s11  ;;  %p738_p10 = scmp.lt.u32.totalorder %s734_s11, %s916_s7 }
 0x2f0   :  { %p740_p11 = pnand %p738_p10, %p735_p9 }
 0x2f2   :  { %743 = shalt.err (!%p740_p11)
}
 0x2f3   :  { %446 = dma.vmem_to_hbm [thread:$0]  %s441_s8, 512, %s916_s7, [#allocation4], %s754_s13, %s754_s13, %s755_s14  }
 0x2f4   :  { %750 = dma.done.wait [#allocation4], 512  }
 0x2f5   :  { %751 = vsyncadd [#allocation4], 4294966784 }
 0x2f6   :  { %450 = vsyncpa [#allocation3], 1 }
 0x2f7   :  { %451 = vsyncpa [#allocation6], 1 }
 0x2f8   :  { %452 = vsyncpa [#allocation9], 1 }
 0x2f9   :  { %453 = vsyncpa [#allocation4], 1 }

</bundles_post_ra>
